<compile_context>
chip_gen: v5e
topology: v5e:2x2
jax: 0.10.0
libtpu: 0.0.40
codegen_flags: <defaults>
</compile_context>

<pallas_src>
import jax
import jax.numpy as jnp
from jax.experimental import pallas as pl
from jax.experimental.pallas import tpu as pltpu

_LANE = 128


def _device_kind() -> str:
    try:
        return jax.devices()[0].device_kind.lower()
    except Exception:
        return ""


def _is_multi_core_chip(kind: str) -> bool:
    # v7x exposes two TensorCores per chip; v5e/v6e have one.
    return "v7" in kind


def _default_block_rows(kind: str) -> int:
    # 2 MiB f32 per-input blocks on 128-MiB-VMEM chips (v5e/v6e),
    # 1 MiB on v7x (64 MiB physical VMEM per TC, faster HBM).
    return 2048 if "v7" in kind else 4096


def _make_mse_partial_kernel(*, block_rows, rows, num_slices, k_blocks,
                             needs_mask):
    """Builds the per-config kernel.  Accumulates partial sums of (x-t)^2
    into a (1, 128) output block revisited across the reduction axis."""

    def kernel(x_ref, t_ref, o_ref):
        if num_slices == 1:
            k = pl.program_id(0)
            row_start = k * block_rows
        else:
            s = pl.program_id(0)
            k = pl.program_id(1)
            row_start = (s * k_blocks + k) * block_rows

        @pl.when(k == 0)
        def _init():
            o_ref[...] = jnp.zeros_like(o_ref)

        d = x_ref[...].astype(jnp.float32) - t_ref[...].astype(jnp.float32)

        if needs_mask:
            # Valid rows remaining for this block (may be <= 0 for fully
            # overhanging blocks, > block_rows for interior blocks).
            rem = rows - row_start
            row_ids = jax.lax.broadcasted_iota(
                jnp.int32, (block_rows, _LANE), 0)
            d = jnp.where(row_ids < rem, d, 0.0)

        # Per-step sublane reduction (VALU adds + one XLU reduce) into the
        # tiny VMEM-resident accumulator.
        o_ref[...] += jnp.sum(d * d, axis=0, keepdims=True)

    return kernel


def content_loss_pallas(x, target, *, max_block_rows=None):
    """Returns (input_passthrough, mse_loss_scalar)."""
    assert x.shape == target.shape, (x.shape, target.shape)

    kind = _device_kind()
    n = int(x.size)
    itemsize = jnp.dtype(x.dtype).itemsize
    # Packed sublane multiple for the input dtype: 8 (f32), 16 (bf16/f16),
    # 32 (int8/fp8).
    sub = max(8, 32 // itemsize)

    if max_block_rows is None:
        max_block_rows = _default_block_rows(kind)
    max_block_rows = max(sub, (int(max_block_rows) // sub) * sub)

    xf = x.reshape(-1)
    tf = target.reshape(-1)

    pad = (-n) % _LANE
    if pad:
        # Rare path (n not a multiple of 128): pad by < 128 zeros so the
        # flattened tensor can be viewed lane-dense.  Padded elements are
        # zero in both operands -> contribute (0 - 0)^2 = 0.
        # TODO(synk): a fully copy-free ragged-lane path would need 1-D
        # blocks + element-level masking; conv feature maps never hit this.
        xf = jnp.pad(xf, (0, pad))
        tf = jnp.pad(tf, (0, pad))
    rows = (n + pad) // _LANE

    x2 = xf.reshape(rows, _LANE)
    t2 = tf.reshape(rows, _LANE)

    if rows <= max_block_rows:
        block_rows = rows            # single full-extent block (always legal)
    else:
        block_rows = max_block_rows  # multiple of the dtype sublane multiple
    blocks_total = -(-rows // block_rows)

    # Use both TensorCores only on multi-core chips (v7x) with enough work.
    num_slices = 2 if (_is_multi_core_chip(kind) and blocks_total >= 2) else 1
    k_blocks = -(-blocks_total // num_slices)
    coverage_rows = num_slices * k_blocks * block_rows
    needs_mask = coverage_rows != rows

    kernel = _make_mse_partial_kernel(
        block_rows=block_rows, rows=rows, num_slices=num_slices,
        k_blocks=k_blocks, needs_mask=needs_mask)

    if num_slices == 1:
        grid = (k_blocks,)
        in_spec = pl.BlockSpec((block_rows, _LANE), lambda k: (k, 0))
        out_spec = pl.BlockSpec((1, _LANE), lambda k: (0, 0))
        out_shape = jax.ShapeDtypeStruct((1, _LANE), jnp.float32)
        dim_sem = ("arbitrary",)
    else:
        grid = (num_slices, k_blocks)
        last_block = blocks_total - 1

        def in_map(s, k):
            # Clamp overhanging blocks (odd blocks_total) into range; the
            # kernel masks their contribution to zero.
            return (jnp.minimum(s * k_blocks + k, last_block), 0)

        in_spec = pl.BlockSpec((block_rows, _LANE), in_map)
        # 3-D output so the block's last two dims equal the full array dims.
        out_spec = pl.BlockSpec((None, 1, _LANE), lambda s, k: (s, 0, 0))
        out_shape = jax.ShapeDtypeStruct((num_slices, 1, _LANE), jnp.float32)
        # Only core-level semantics shard a grid axis across TensorCores.
        core_parallel = getattr(pltpu, "CORE_PARALLEL", "parallel")
        dim_sem = (core_parallel, "arbitrary")

    in_block_bytes = block_rows * _LANE * itemsize
    # 2 inputs x 2 pipeline buffers (+ tiny output), with 2x headroom; keep
    # well under v7x's 64 MiB physical VMEM.
    vmem_limit = min(max(2 * (2 * 2 * in_block_bytes), 16 * 1024 * 1024),
                     32 * 1024 * 1024)

    cost = pl.CostEstimate(
        flops=3 * rows * _LANE + rows,
        transcendentals=0,
        bytes_accessed=2 * rows * _LANE * itemsize + num_slices * _LANE * 4,
    )

    partials = pl.pallas_call(
        kernel,
        out_shape=out_shape,
        grid_spec=pltpu.PrefetchScalarGridSpec(
            num_scalar_prefetch=0,
            grid=grid,
            in_specs=[in_spec, in_spec],
            out_specs=out_spec,
        ),
        compiler_params=pltpu.CompilerParams(
            dimension_semantics=dim_sem,
            vmem_limit_bytes=int(vmem_limit),
        ),
        cost_estimate=cost,
    )(x2, t2)

    # Tiny (128 or 256 element) final reduction + mean normalization in JAX.
    loss = jnp.sum(partials) / jnp.float32(n)

    # Module returns the input unchanged (identity); loss is the side output.
    return x, loss


class ContentLoss:
    """JAX/Pallas analogue of the PyTorch ContentLoss module.

    Note: under jax.jit, prefer the functional `content_loss_pallas` return;
    storing `self.loss` is a Python side effect (it holds a tracer when
    traced)."""

    def __init__(self, target):
        self.target = jax.lax.stop_gradient(target)  # .detach()
        self.loss = None

    def __call__(self, x):
        out, loss = content_loss_pallas(x, self.target)
        self.loss = loss
        return out


if __name__ == "__main__":
    key = jax.random.PRNGKey(0)
    k_t, k_x, k_t2, k_x2 = jax.random.split(key, 4)

    # Small NCHW feature maps: batch=2, channels=4, spatial=16x16.
    shape = (2, 4, 16, 16)
    target = jax.random.normal(k_t, shape, dtype=jnp.float32)
    x = jax.random.normal(k_x, shape, dtype=jnp.float32)

    module = ContentLoss(target)
    out = module(x)
    out = jax.block_until_ready(out)
    loss = jax.block_until_ready(module.loss)

    ref_loss = jnp.mean((x - target) ** 2)
    assert out.shape == x.shape
    assert jnp.allclose(out, x)
    assert jnp.allclose(loss, ref_loss, rtol=1e-5, atol=1e-6), (loss, ref_loss)

    # Multi-block reduction path (small blocks force several grid steps).
    _, loss_mb = content_loss_pallas(x, target, max_block_rows=8)
    loss_mb = jax.block_until_ready(loss_mb)
    assert jnp.allclose(loss_mb, ref_loss, rtol=1e-5, atol=1e-6), (
        loss_mb, ref_loss)

    # Ragged shape: n % 128 != 0 (tiny lane pad) + in-kernel row masking.
    shape2 = (1, 3, 37, 53)
    target2 = jax.random.normal(k_t2, shape2, dtype=jnp.float32)
    x2 = jax.random.normal(k_x2, shape2, dtype=jnp.float32)
    ref_loss2 = jnp.mean((x2 - target2) ** 2)
    _, loss2 = content_loss_pallas(x2, target2)
    loss2 = jax.block_until_ready(loss2)
    assert jnp.allclose(loss2, ref_loss2, rtol=1e-5, atol=1e-6), (
        loss2, ref_loss2)
    _, loss2_mb = content_loss_pallas(x2, target2, max_block_rows=8)
    loss2_mb = jax.block_until_ready(loss2_mb)
    assert jnp.allclose(loss2_mb, ref_loss2, rtol=1e-5, atol=1e-6), (
        loss2_mb, ref_loss2)

    # bf16 activations stay bf16 in HBM and are upcast inside the kernel.
    xb = x.astype(jnp.bfloat16)
    tb = target.astype(jnp.bfloat16)
    _, loss_b = content_loss_pallas(xb, tb)
    loss_b = jax.block_until_ready(loss_b)
    ref_loss_b = jnp.mean(
        (xb.astype(jnp.float32) - tb.astype(jnp.float32)) ** 2)
    assert jnp.allclose(loss_b, ref_loss_b, rtol=1e-3, atol=1e-4), (
        loss_b, ref_loss_b)

    print("KERNEL_OK")
</pallas_src>

<mosaic_0001>
module attributes {stable_mosaic.version = 11 : i64} {
  func.func @kernel(%arg0: i32, %arg1: memref<16x128xf32, #tpu.memory_space<vmem>>, %arg2: memref<16x128xf32, #tpu.memory_space<vmem>>, %arg3: memref<1x128xf32, #tpu.memory_space<vmem>>) attributes {dimension_semantics = [#tpu.dimension_semantics<arbitrary>], iteration_bounds = array<i64: 1>, scalar_prefetch = 0 : i64, scratch_operands = 0 : i64, tpu.core_type = #tpu.core_type<tc>, window_params = [{transform_indices = @transform_0, window_bounds = array<i64: 16, 128>}, {transform_indices = @transform_1, window_bounds = array<i64: 16, 128>}, {pipeline_mode = #tpu.pipeline_mode<synchronous>, transform_indices = @transform_2, window_bounds = array<i64: 1, 128>}]} {
    %c0_i32 = arith.constant 0 : i32
    %0 = arith.cmpi eq, %arg0, %c0_i32 : i32
    %1 = arith.extui %0 : i1 to i32
    %c0_i32_0 = arith.constant 0 : i32
    %2 = arith.cmpi ne, %1, %c0_i32_0 : i32
    scf.if %2 {
      %cst_8 = arith.constant 0.000000e+00 : f32
      %12 = vector.broadcast %cst_8 : f32 to vector<1x128xf32>
      %c0_9 = arith.constant 0 : index
      %c0_10 = arith.constant 0 : index
      %13 = vector.load %arg3[%c0_9, %c0_10] : memref<1x128xf32, #tpu.memory_space<vmem>>, vector<1x128xf32>
      tpu.vector_store %arg3[%c0_9, %c0_10], %12 {strides = array<i32>} : memref<1x128xf32, #tpu.memory_space<vmem>>, vector<1x128xf32>,
    } else {
    }
    %c0 = arith.constant 0 : index
    %c0_1 = arith.constant 0 : index
    %3 = vector.load %arg1[%c0, %c0_1] : memref<16x128xf32, #tpu.memory_space<vmem>>, vector<16x128xf32>
    %c0_2 = arith.constant 0 : index
    %c0_3 = arith.constant 0 : index
    %4 = vector.load %arg2[%c0_2, %c0_3] : memref<16x128xf32, #tpu.memory_space<vmem>>, vector<16x128xf32>
    %5 = arith.subf %3, %4 : vector<16x128xf32>
    %c0_4 = arith.constant 0 : index
    %c0_5 = arith.constant 0 : index
    %6 = vector.load %arg3[%c0_4, %c0_5] : memref<1x128xf32, #tpu.memory_space<vmem>>, vector<1x128xf32>
    %7 = arith.mulf %5, %5 : vector<16x128xf32>
    %cst = arith.constant dense<0.000000e+00> : vector<128xf32>
    %8 = vector.multi_reduction <add>, %7, %cst [0] : vector<16x128xf32> to vector<128xf32>
    %9 = vector.shape_cast %8 : vector<128xf32> to vector<1x128xf32>
    %10 = arith.addf %6, %9 : vector<1x128xf32>
    %c0_6 = arith.constant 0 : index
    %c0_7 = arith.constant 0 : index
    %11 = vector.load %arg3[%c0_6, %c0_7] : memref<1x128xf32, #tpu.memory_space<vmem>>, vector<1x128xf32>
    tpu.vector_store %arg3[%c0_6, %c0_7], %10 {strides = array<i32>} : memref<1x128xf32, #tpu.memory_space<vmem>>, vector<1x128xf32>,
    return
  }
  func.func @transform_0(%arg0: i32) -> (i32, i32) {
    %c0_i32 = arith.constant 0 : i32
    %c0_i32_0 = arith.constant 0 : i32
    return %arg0, %c0_i32 : i32, i32
  }
  func.func @transform_1(%arg0: i32) -> (i32, i32) {
    %c0_i32 = arith.constant 0 : i32
    %c0_i32_0 = arith.constant 0 : i32
    return %arg0, %c0_i32 : i32, i32
  }
  func.func @transform_2(%arg0: i32) -> (i32, i32) {
    %c0_i32 = arith.constant 0 : i32
    %c0_i32_0 = arith.constant 0 : i32
    %c0_i32_1 = arith.constant 0 : i32
    return %c0_i32, %c0_i32_0 : i32, i32
  }
}

</mosaic_0001>

<bundles_post_ra>
// kernel: tpu_custom_call.1
= control target key start
LH: loop header
LB: loop body
LE: loop exit
PB: predicated region body
PF: predicated region fallthrough
CT: control target
= control target key end

     0   :  { %7 = vsyncpa [#allocation3], 0  ;;  %s199_s0 = inlined_call_operand.hbm [shape: f32[16,128], index: 0, kind: input, shape index: {}]   ;;  %s200_s1 = inlined_call_operand.hbm [shape: f32[16,128], index: 1, kind: input, shape index: {}]   ;;  %s201_s2 = inlined_call_operand.hbm [shape: f32[1,128], index: 2, kind: output, shape index: {}]  }
   0x1   :  { %8 = vsyncpa [#allocation6], 0 }
   0x2   :  { %9 = vsyncpa [#allocation4], 0  ;;  %s14_s11 = sshll.u32 %s199_s0, 4  ;;  %s169_s12 = smov [#allocation2]   ;;  %s15_s11 = int_to_ptr.hbm [resolvable:$true] %s14_s11 }
   0x3   :  { %s16_s13 = sshll.u32 %s169_s12, 4  ;;  %s27_s16 = sshll.u32 %s200_s1, 4  ;;  %s17_s13 = int_to_ptr.vmem [resolvable:$true] %s16_s13  ;;  %s28_s16 = int_to_ptr.hbm [resolvable:$true] %s27_s16 }
   0x4   :  { %s170_s17 = smov 128   ;;  %s171_s18 = smov 8  }
   0x5   :  { %22 = dma.hbm_to_vmem [thread:$0]  %s15_s11, 256, %s17_s13, [#allocation3], %s170_s17, %s170_s17, %s171_s18  }
   0x6   :  { %s172_s19 = smov [#allocation5]  }
   0x7   :  { %s29_s20 = sshll.u32 %s172_s19, 4  ;;  %s30_s20 = int_to_ptr.vmem [resolvable:$true] %s29_s20 }
   0x8   :  { %35 = dma.hbm_to_vmem [thread:$0]  %s28_s16, 256, %s30_s20, [#allocation6], %s170_s17, %s170_s17, %s171_s18  }
   0x9   :  { %163 = dma.done.wait [#allocation3], 256  }
   0xa   :  { %164 = vsyncadd [#allocation3], 4294967040 }
   0xb   :  { %165 = dma.done.wait [#allocation6], 256  }
   0xc   :  { %166 = vsyncadd [#allocation6], 4294967040  ;;  %v173_v0 = vmov 0.0   ;;  %v49_v1 = vld [vmem:[#allocation2] sm:$0xff]  ;;  %v50_v2 = vld [vmem:[#allocation2 + $0x8] sm:$0xff]  ;;  %s174_s0 = smov [#allocation7]  }
   0xd   :  { %48 = vst [vmem:[#allocation7] sm:$0x1] %v173_v0  ;;  %v51_v3 = vld [vmem:[#allocation5] sm:$0xff]  ;;  %v52_v4 = vld [vmem:[#allocation5 + $0x8] sm:$0xff]  ;;  %s72_s1 = sshll.u32 %s174_s0, 4  ;;  %s74_s23 = sshll.u32 %s201_s2, 4  ;;  %s73_s1 = int_to_ptr.vmem [resolvable:$true] %s72_s1  ;;  %s75_s23 = int_to_ptr.hbm [resolvable:$true] %s74_s23 }
   0xe   :  { %v53_v5 = vsub.f32 %v49_v1, %v51_v3  ;;  %v54_v6 = vsub.f32 %v50_v2, %v52_v4 }
  0x10   :  { %v56_v7 = vmul.f32 %v53_v5, %v53_v5  ;;  %v57_v8 = vmul.f32 %v54_v6, %v54_v6 }
  0x12   :  { %v58_v9 = vadd.f32 %v57_v8, %v56_v7 }
  0x14   :  { %v59_v10 = vrot.slane %v58_v9, 4  ;;  %v55_v15 = vld [vmem:[#allocation7] sm:$0x1] }
  0x16   :  { %v60_v11 = vadd.f32 %v59_v10, %v58_v9 }
  0x18   :  { %v61_v12 = vrot.slane %v60_v11, 2 }
  0x1a   :  { %v62_v13 = vadd.f32 %v61_v12, %v60_v11 }
  0x1c   :  { %v63_v14 = vrot.slane %v62_v13, 1 }
  0x1e   :  { %v64_v16 = vadd.f32 %v63_v14, %v62_v13 }
  0x20   :  { %v65_v17 = vadd.f32 %v64_v16, %v55_v15 }
  0x22   :  { %66 = vst [vmem:[#allocation7] sm:$0x1] %v65_v17 }
  0x23   :  { %77 = dma.vmem_to_hbm [thread:$0]  %s73_s1, 16, %s75_s23, [#allocation4]  }
  0x24   :  { %167 = dma.done.wait [#allocation4], 16  }
  0x25   :  { %168 = vsyncadd [#allocation4], 4294967280 }
  0x26   :  { %82 = vsyncpa [#allocation3], 1 }
  0x27   :  { %83 = vsyncpa [#allocation6], 1 }
  0x28   :  { %84 = vsyncpa [#allocation4], 1 }

</bundles_post_ra>
